<compile_context>
chip_gen: v7x
topology: tpu7x:2x2x1
jax: 0.10.0
libtpu: 0.0.40
codegen_flags: <defaults>
</compile_context>

<pallas_src>
import jax
import jax.numpy as jnp
from jax.experimental import pallas as pl
from jax.experimental.pallas import tpu as pltpu


def _round_up(x, m):
    return (x + m - 1) // m * m


# ------------------------------ fused kernel -------------------------------

def _fc_block_kernel(x_ref, m0_ref, m1_ref,
                     w1_ref, b1_ref, w2_ref, b2_ref, w3_ref, b3_ref,
                     o_ref):
    # dropout on the input (mask already carries the 1/keep_prob scale)
    h = x_ref[...] * m0_ref[...]
    # fc1 + bias + ReLU
    h = jnp.dot(h, w1_ref[...], preferred_element_type=jnp.float32) + b1_ref[...]
    h = jnp.maximum(h, 0.0)
    # dropout after relu(fc1)
    h = h * m1_ref[...]
    # fc2 + bias + ReLU
    h = jnp.dot(h, w2_ref[...], preferred_element_type=jnp.float32) + b2_ref[...]
    h = jnp.maximum(h, 0.0)
    # fc3 + bias (no activation)
    h = jnp.dot(h, w3_ref[...], preferred_element_type=jnp.float32) + b3_ref[...]
    o_ref[...] = h.astype(o_ref.dtype)


# ------------------------------ wrapper -------------------------------------

def fc_block_forward(x, params, mask0, mask1, *, block_rows=256):
    """Fused FCBlockVGG forward.

    x:      (B, input_dim) f32
    mask0:  (B, input_dim) scaled dropout mask applied to the input
    mask1:  (B, hidden_dims[0]) scaled dropout mask applied to relu(fc1(.))
    Weights are stored (in, out); biases (out,).
    """
    b, k = x.shape
    h1 = params["fc1_w"].shape[1]
    h2 = params["fc2_w"].shape[1]
    out_dim = params["fc3_w"].shape[1]

    # sublane/lane aligned padded sizes
    b_pad8 = _round_up(b, 8)
    tm = block_rows if b_pad8 >= block_rows else b_pad8
    b_pad = _round_up(b, tm)
    k_pad = _round_up(k, 128)
    h1_pad = _round_up(h1, 128)
    h2_pad = _round_up(h2, 128)
    o_pad = _round_up(out_dim, 128)

    f32 = jnp.float32

    def pad2(a, rows, cols):
        a = a.astype(f32)
        return jnp.pad(a, ((0, rows - a.shape[0]), (0, cols - a.shape[1])))

    xp = pad2(x, b_pad, k_pad)
    m0p = pad2(mask0, b_pad, k_pad)
    m1p = pad2(mask1, b_pad, h1_pad)
    w1p = pad2(params["fc1_w"], k_pad, h1_pad)
    w2p = pad2(params["fc2_w"], h1_pad, h2_pad)
    w3p = pad2(params["fc3_w"], h2_pad, o_pad)
    b1p = pad2(params["fc1_b"].reshape(1, -1), 1, h1_pad)
    b2p = pad2(params["fc2_b"].reshape(1, -1), 1, h2_pad)
    b3p = pad2(params["fc3_b"].reshape(1, -1), 1, o_pad)

    row_blk = lambda i: (i, 0)   # x / masks / output: tiled over rows
    whole = lambda i: (0, 0)     # weights / biases: resident, loaded once

    out = pl.pallas_call(
        _fc_block_kernel,
        out_shape=jax.ShapeDtypeStruct((b_pad, o_pad), f32),
        grid_spec=pltpu.PrefetchScalarGridSpec(
            num_scalar_prefetch=0,
            grid=(b_pad // tm,),
            in_specs=[
                pl.BlockSpec((tm, k_pad), row_blk),       # x
                pl.BlockSpec((tm, k_pad), row_blk),       # mask0
                pl.BlockSpec((tm, h1_pad), row_blk),      # mask1
                pl.BlockSpec((k_pad, h1_pad), whole),     # w1
                pl.BlockSpec((1, h1_pad), whole),         # b1
                pl.BlockSpec((h1_pad, h2_pad), whole),    # w2
                pl.BlockSpec((1, h2_pad), whole),         # b2
                pl.BlockSpec((h2_pad, o_pad), whole),     # w3
                pl.BlockSpec((1, o_pad), whole),          # b3
            ],
            out_specs=pl.BlockSpec((tm, o_pad), row_blk),
        ),
        compiler_params=pltpu.CompilerParams(
            dimension_semantics=("parallel",)),
    )(xp, m0p, m1p, w1p, b1p, w2p, b2p, w3p, b3p)

    return out[:b, :out_dim]


# ------------------------------ reference -----------------------------------

def reference_forward(x, params, mask0, mask1):
    # Pure-JAX reference with the same dropout masks.
    h = x * mask0
    h = jnp.maximum(h @ params["fc1_w"] + params["fc1_b"], 0.0)
    h = h * mask1
    h = jnp.maximum(h @ params["fc2_w"] + params["fc2_b"], 0.0)
    return h @ params["fc3_w"] + params["fc3_b"]


# ------------------------------ params / main -------------------------------

def init_params(key, input_dim, hidden_dims, output_dim=10):
    # PyTorch nn.Linear default init: U(-1/sqrt(fan_in), 1/sqrt(fan_in)).
    def uniform(k, shape, fan_in):
        bound = 1.0 / jnp.sqrt(jnp.float32(fan_in))
        return jax.random.uniform(k, shape, jnp.float32, -bound, bound)

    h1, h2 = hidden_dims
    ks = jax.random.split(key, 6)
    return {
        "fc1_w": uniform(ks[0], (input_dim, h1), input_dim),
        "fc1_b": uniform(ks[1], (h1,), input_dim),
        "fc2_w": uniform(ks[2], (h1, h2), h1),
        "fc2_b": uniform(ks[3], (h2,), h1),
        "fc3_w": uniform(ks[4], (h2, output_dim), h2),
        "fc3_b": uniform(ks[5], (output_dim,), h2),
    }


def make_dropout_masks(key, batch, input_dim, h1, p=0.5):
    # Inverted-dropout masks matching F.dropout(p=0.5, training=True).
    k0, k1 = jax.random.split(key)
    keep = 1.0 - p
    m0 = jax.random.bernoulli(k0, keep, (batch, input_dim)).astype(jnp.float32) / keep
    m1 = jax.random.bernoulli(k1, keep, (batch, h1)).astype(jnp.float32) / keep
    return m0, m1


if __name__ == "__main__":
    key = jax.random.PRNGKey(0)
    kx, kp, kd = jax.random.split(key, 3)

    batch, input_dim, hidden_dims, output_dim = 16, 400, (120, 84), 10
    x = jax.random.normal(kx, (batch, input_dim), jnp.float32)
    params = init_params(kp, input_dim, hidden_dims, output_dim)
    m0, m1 = make_dropout_masks(kd, batch, input_dim, hidden_dims[0])

    fwd = jax.jit(fc_block_forward)
    out = jax.block_until_ready(fwd(x, params, m0, m1))

    ref = jax.block_until_ready(reference_forward(x, params, m0, m1))
    assert out.shape == (batch, output_dim), out.shape
    max_err = float(jnp.max(jnp.abs(out - ref)))
    assert jnp.allclose(out, ref, atol=1e-4, rtol=1e-4), max_err

    print("KERNEL_OK")
</pallas_src>

<mosaic_0001>
module attributes {stable_mosaic.version = 11 : i64} {
  func.func @_fc_block_kernel(%arg0: i32, %arg1: memref<16x512xf32, #tpu.memory_space<vmem>>, %arg2: memref<16x512xf32, #tpu.memory_space<vmem>>, %arg3: memref<16x128xf32, #tpu.memory_space<vmem>>, %arg4: memref<512x128xf32, #tpu.memory_space<vmem>>, %arg5: memref<1x128xf32, #tpu.memory_space<vmem>>, %arg6: memref<128x128xf32, #tpu.memory_space<vmem>>, %arg7: memref<1x128xf32, #tpu.memory_space<vmem>>, %arg8: memref<128x128xf32, #tpu.memory_space<vmem>>, %arg9: memref<1x128xf32, #tpu.memory_space<vmem>>, %arg10: memref<16x128xf32, #tpu.memory_space<vmem>>) attributes {dimension_semantics = [#tpu.dimension_semantics<parallel>], iteration_bounds = array<i64: 1>, scalar_prefetch = 0 : i64, scratch_operands = 0 : i64, tpu.core_type = #tpu.core_type<tc>, window_params = [{transform_indices = @transform_0, window_bounds = array<i64: 16, 512>}, {transform_indices = @transform_1, window_bounds = array<i64: 16, 512>}, {transform_indices = @transform_2, window_bounds = array<i64: 16, 128>}, {pipeline_mode = #tpu.pipeline_mode<synchronous>, transform_indices = @transform_3, window_bounds = array<i64: 512, 128>}, {pipeline_mode = #tpu.pipeline_mode<synchronous>, transform_indices = @transform_4, window_bounds = array<i64: 1, 128>}, {pipeline_mode = #tpu.pipeline_mode<synchronous>, transform_indices = @transform_5, window_bounds = array<i64: 128, 128>}, {pipeline_mode = #tpu.pipeline_mode<synchronous>, transform_indices = @transform_6, window_bounds = array<i64: 1, 128>}, {pipeline_mode = #tpu.pipeline_mode<synchronous>, transform_indices = @transform_7, window_bounds = array<i64: 128, 128>}, {pipeline_mode = #tpu.pipeline_mode<synchronous>, transform_indices = @transform_8, window_bounds = array<i64: 1, 128>}, {transform_indices = @transform_9, window_bounds = array<i64: 16, 128>}]} {
    %c0 = arith.constant 0 : index
    %c0_0 = arith.constant 0 : index
    %0 = vector.load %arg1[%c0, %c0_0] : memref<16x512xf32, #tpu.memory_space<vmem>>, vector<16x512xf32>
    %c0_1 = arith.constant 0 : index
    %c0_2 = arith.constant 0 : index
    %1 = vector.load %arg2[%c0_1, %c0_2] : memref<16x512xf32, #tpu.memory_space<vmem>>, vector<16x512xf32>
    %2 = arith.mulf %0, %1 : vector<16x512xf32>
    %c0_3 = arith.constant 0 : index
    %c0_4 = arith.constant 0 : index
    %3 = vector.load %arg4[%c0_3, %c0_4] : memref<512x128xf32, #tpu.memory_space<vmem>>, vector<512x128xf32>
    %cst = arith.constant dense<0.000000e+00> : vector<16x128xf32>
    %4 = tpu.matmul %2, %3, %cst {dimension_numbers = #tpu.dot_dimension_numbers<[1], [0], [0], [1], [0, 0, 1, 1], [], []>} : vector<16x512xf32>, vector<512x128xf32>, vector<16x128xf32> -> vector<16x128xf32>
    %c0_5 = arith.constant 0 : index
    %c0_6 = arith.constant 0 : index
    %5 = vector.load %arg5[%c0_5, %c0_6] : memref<1x128xf32, #tpu.memory_space<vmem>>, vector<1x128xf32>
    %6 = vector.broadcast %5 : vector<1x128xf32> to vector<16x128xf32>
    %7 = arith.addf %4, %6 : vector<16x128xf32>
    %cst_7 = arith.constant 0.000000e+00 : f32
    %8 = vector.broadcast %cst_7 : f32 to vector<16x128xf32>
    %9 = arith.maximumf %7, %8 : vector<16x128xf32>
    %c0_8 = arith.constant 0 : index
    %c0_9 = arith.constant 0 : index
    %10 = vector.load %arg3[%c0_8, %c0_9] : memref<16x128xf32, #tpu.memory_space<vmem>>, vector<16x128xf32>
    %11 = arith.mulf %9, %10 : vector<16x128xf32>
    %c0_10 = arith.constant 0 : index
    %c0_11 = arith.constant 0 : index
    %12 = vector.load %arg6[%c0_10, %c0_11] : memref<128x128xf32, #tpu.memory_space<vmem>>, vector<128x128xf32>
    %cst_12 = arith.constant dense<0.000000e+00> : vector<16x128xf32>
    %13 = tpu.matmul %11, %12, %cst_12 {dimension_numbers = #tpu.dot_dimension_numbers<[1], [0], [0], [1], [0, 0, 1, 1], [], []>} : vector<16x128xf32>, vector<128x128xf32>, vector<16x128xf32> -> vector<16x128xf32>
    %c0_13 = arith.constant 0 : index
    %c0_14 = arith.constant 0 : index
    %14 = vector.load %arg7[%c0_13, %c0_14] : memref<1x128xf32, #tpu.memory_space<vmem>>, vector<1x128xf32>
    %15 = vector.broadcast %14 : vector<1x128xf32> to vector<16x128xf32>
    %16 = arith.addf %13, %15 : vector<16x128xf32>
    %cst_15 = arith.constant 0.000000e+00 : f32
    %17 = vector.broadcast %cst_15 : f32 to vector<16x128xf32>
    %18 = arith.maximumf %16, %17 : vector<16x128xf32>
    %c0_16 = arith.constant 0 : index
    %c0_17 = arith.constant 0 : index
    %19 = vector.load %arg8[%c0_16, %c0_17] : memref<128x128xf32, #tpu.memory_space<vmem>>, vector<128x128xf32>
    %cst_18 = arith.constant dense<0.000000e+00> : vector<16x128xf32>
    %20 = tpu.matmul %18, %19, %cst_18 {dimension_numbers = #tpu.dot_dimension_numbers<[1], [0], [0], [1], [0, 0, 1, 1], [], []>} : vector<16x128xf32>, vector<128x128xf32>, vector<16x128xf32> -> vector<16x128xf32>
    %c0_19 = arith.constant 0 : index
    %c0_20 = arith.constant 0 : index
    %21 = vector.load %arg9[%c0_19, %c0_20] : memref<1x128xf32, #tpu.memory_space<vmem>>, vector<1x128xf32>
    %22 = vector.broadcast %21 : vector<1x128xf32> to vector<16x128xf32>
    %23 = arith.addf %20, %22 : vector<16x128xf32>
    %c0_21 = arith.constant 0 : index
    %c0_22 = arith.constant 0 : index
    %24 = vector.load %arg10[%c0_21, %c0_22] : memref<16x128xf32, #tpu.memory_space<vmem>>, vector<16x128xf32>
    tpu.vector_store %arg10[%c0_21, %c0_22], %23 {strides = array<i32>} : memref<16x128xf32, #tpu.memory_space<vmem>>, vector<16x128xf32>,
    return
  }
  func.func @transform_0(%arg0: i32) -> (i32, i32) {
    %c0_i32 = arith.constant 0 : i32
    %c0_i32_0 = arith.constant 0 : i32
    return %arg0, %c0_i32 : i32, i32
  }
  func.func @transform_1(%arg0: i32) -> (i32, i32) {
    %c0_i32 = arith.constant 0 : i32
    %c0_i32_0 = arith.constant 0 : i32
    return %arg0, %c0_i32 : i32, i32
  }
  func.func @transform_2(%arg0: i32) -> (i32, i32) {
    %c0_i32 = arith.constant 0 : i32
    %c0_i32_0 = arith.constant 0 : i32
    return %arg0, %c0_i32 : i32, i32
  }
  func.func @transform_3(%arg0: i32) -> (i32, i32) {
    %c0_i32 = arith.constant 0 : i32
    %c0_i32_0 = arith.constant 0 : i32
    %c0_i32_1 = arith.constant 0 : i32
    return %c0_i32, %c0_i32_0 : i32, i32
  }
  func.func @transform_4(%arg0: i32) -> (i32, i32) {
    %c0_i32 = arith.constant 0 : i32
    %c0_i32_0 = arith.constant 0 : i32
    %c0_i32_1 = arith.constant 0 : i32
    return %c0_i32, %c0_i32_0 : i32, i32
  }
  func.func @transform_5(%arg0: i32) -> (i32, i32) {
    %c0_i32 = arith.constant 0 : i32
    %c0_i32_0 = arith.constant 0 : i32
    %c0_i32_1 = arith.constant 0 : i32
    return %c0_i32, %c0_i32_0 : i32, i32
  }
  func.func @transform_6(%arg0: i32) -> (i32, i32) {
    %c0_i32 = arith.constant 0 : i32
    %c0_i32_0 = arith.constant 0 : i32
    %c0_i32_1 = arith.constant 0 : i32
    return %c0_i32, %c0_i32_0 : i32, i32
  }
  func.func @transform_7(%arg0: i32) -> (i32, i32) {
    %c0_i32 = arith.constant 0 : i32
    %c0_i32_0 = arith.constant 0 : i32
    %c0_i32_1 = arith.constant 0 : i32
    return %c0_i32, %c0_i32_0 : i32, i32
  }
  func.func @transform_8(%arg0: i32) -> (i32, i32) {
    %c0_i32 = arith.constant 0 : i32
    %c0_i32_0 = arith.constant 0 : i32
    %c0_i32_1 = arith.constant 0 : i32
    return %c0_i32, %c0_i32_0 : i32, i32
  }
  func.func @transform_9(%arg0: i32) -> (i32, i32) {
    %c0_i32 = arith.constant 0 : i32
    %c0_i32_0 = arith.constant 0 : i32
    return %arg0, %c0_i32 : i32, i32
  }
}

</mosaic_0001>

<bundles_post_ra>
// kernel: fc_block_forward.1
= control target key start
LH: loop header
LB: loop body
LE: loop exit
PB: predicated region body
PF: predicated region fallthrough
CT: control target
= control target key end

     0   :  { %s1256_s0 = inlined_call_operand.vmem [shape: f32[16,512], index: 0, kind: input, shape index: {}]   ;;  %s1257_s1 = inlined_call_operand.vmem [shape: f32[16,512], index: 1, kind: input, shape index: {}]   ;;  %s1258_s2 = inlined_call_operand.vmem [shape: f32[16,128], index: 2, kind: input, shape index: {}]   ;;  %s1259_s3 = inlined_call_operand.vmem [shape: f32[512,128], index: 3, kind: input, shape index: {}]   ;;  %s1260_s4 = inlined_call_operand.vmem [shape: f32[1,128], index: 4, kind: input, shape index: {}]   ;;  %s1261_s5 = inlined_call_operand.vmem [shape: f32[128,128], index: 5, kind: input, shape index: {}]   ;;  %s1262_s6 = inlined_call_operand.vmem [shape: f32[1,128], index: 6, kind: input, shape index: {}]   ;;  %s1263_s7 = inlined_call_operand.vmem [shape: f32[128,128], index: 7, kind: input, shape index: {}]   ;;  %s1264_s8 = inlined_call_operand.vmem [shape: f32[1,128], index: 8, kind: input, shape index: {}]   ;;  %s1265_s9 = inlined_call_operand.hbm [shape: f32[16,128], index: 9, kind: output, shape index: {}]  }
   0x1   :  { %v73_v0 = vld [vmem:[%s1259_s3 + $0x80] sm:$0xff]  ;;  %v74_v1 = vld [vmem:[%s1259_s3 + $0x88] sm:$0xff]  ;;  %v75_v11 = vld [vmem:[%s1259_s3 + $0x90] sm:$0xff] }
   0x2   :  { %v57_v2 = vld [vmem:[%s1259_s3] sm:$0xff]  ;;  %v685_v3 = vpack.c.bf16 %v74_v1, %v73_v0  ;;  %v58_v4 = vld [vmem:[%s1259_s3 + $0x8] sm:$0xff]  ;;  %v76_v13 = vld [vmem:[%s1259_s3 + $0x98] sm:$0xff] }
   0x3   :  { %v105_v5 = vld [vmem:[%s1259_s3 + $0x180] sm:$0xff]  ;;  %v106_v6 = vld [vmem:[%s1259_s3 + $0x188] sm:$0xff]  ;;  %v687_v7 = vpack.c.bf16 %v58_v4, %v57_v2  ;;  %v59_v14 = vld [vmem:[%s1259_s3 + $0x10] sm:$0xff]  ;;  %v689_v16 = vpack.c.bf16 %v76_v13, %v75_v11 }
   0x4   :  { %v717_v8 = vpack.c.bf16 %v106_v6, %v105_v5  ;;  %v89_v9 = vld [vmem:[%s1259_s3 + $0x100] sm:$0xff]  ;;  %v90_v10 = vld [vmem:[%s1259_s3 + $0x108] sm:$0xff]  ;;  %686 = vmatprep.subr.bf16.mxu0 %v685_v3  ;;  %v60_v15 = vld [vmem:[%s1259_s3 + $0x18] sm:$0xff] }
   0x5   :  { %v719_v12 = vpack.c.bf16 %v90_v10, %v89_v9  ;;  %688 = vmatpush3.bf16.msra.mxu0 %v687_v7  ;;  %v691_v17 = vpack.c.bf16 %v60_v15, %v59_v14  ;;  %v107_v18 = vld [vmem:[%s1259_s3 + $0x190] sm:$0xff]  ;;  %v108_v19 = vld [vmem:[%s1259_s3 + $0x198] sm:$0xff]  ;;  %v77_v23 = vld [vmem:[%s1259_s3 + $0xa0] sm:$0xff] }
   0x6   :  { %718 = vmatprep.subr.bf16.mxu1 %v717_v8  ;;  %v91_v20 = vld [vmem:[%s1259_s3 + $0x110] sm:$0xff]  ;;  %v721_v21 = vpack.c.bf16 %v108_v19, %v107_v18  ;;  %v92_v22 = vld [vmem:[%s1259_s3 + $0x118] sm:$0xff]  ;;  %v78_v24 = vld [vmem:[%s1259_s3 + $0xa8] sm:$0xff]  ;;  %690 = vmatprep.subr.bf16.mxu0 %v689_v16 }
   0x7   :  { %720 = vmatpush3.bf16.msra.mxu1 %v719_v12  ;;  %v723_v25 = vpack.c.bf16 %v92_v22, %v91_v20  ;;  %v693_v26 = vpack.c.bf16 %v78_v24, %v77_v23  ;;  %v61_v27 = vld [vmem:[%s1259_s3 + $0x20] sm:$0xff]  ;;  %v62_v28 = vld [vmem:[%s1259_s3 + $0x28] sm:$0xff]  ;;  %v79_v35 = vld [vmem:[%s1259_s3 + $0xb0] sm:$0xff] }
   0x8   :  { %v109_v29 = vld [vmem:[%s1259_s3 + $0x1a0] sm:$0xff]  ;;  %722 = vmatprep.subr.bf16.mxu1 %v721_v21  ;;  %v110_v30 = vld [vmem:[%s1259_s3 + $0x1a8] sm:$0xff]  ;;  %v695_v33 = vpack.c.bf16 %v62_v28, %v61_v27  ;;  %v80_v36 = vld [vmem:[%s1259_s3 + $0xb8] sm:$0xff] }
   0x9   :  { %v93_v31 = vld [vmem:[%s1259_s3 + $0x120] sm:$0xff]  ;;  %v94_v32 = vld [vmem:[%s1259_s3 + $0x128] sm:$0xff]  ;;  %692 = vmatpush3.bf16.msra.mxu0 %v691_v17  ;;  %v725_v34 = vpack.c.bf16 %v110_v30, %v109_v29  ;;  %v63_v37 = vld [vmem:[%s1259_s3 + $0x30] sm:$0xff]  ;;  %v697_v39 = vpack.c.bf16 %v80_v36, %v79_v35 }
   0xa   :  { %694 = vmatprep.subr.bf16.mxu0 %v693_v26  ;;  %v727_v38 = vpack.c.bf16 %v94_v32, %v93_v31  ;;  %v64_v40 = vld [vmem:[%s1259_s3 + $0x38] sm:$0xff]  ;;  %v111_v41 = vld [vmem:[%s1259_s3 + $0x1b0] sm:$0xff]  ;;  %v81_v46 = vld [vmem:[%s1259_s3 + $0xc0] sm:$0xff] }
   0xb   :  { %724 = vmatpush3.bf16.msra.mxu1 %v723_v25  ;;  %v112_v42 = vld [vmem:[%s1259_s3 + $0x1b8] sm:$0xff]  ;;  %v95_v44 = vld [vmem:[%s1259_s3 + $0x130] sm:$0xff]  ;;  %v82_v47 = vld [vmem:[%s1259_s3 + $0xc8] sm:$0xff]  ;;  %v699_v48 = vpack.c.bf16 %v64_v40, %v63_v37 }
   0xc   :  { %726 = vmatprep.subr.bf16.mxu1 %v725_v34  ;;  %v729_v43 = vpack.c.bf16 %v112_v42, %v111_v41  ;;  %v96_v45 = vld [vmem:[%s1259_s3 + $0x138] sm:$0xff]  ;;  %v113_v49 = vld [vmem:[%s1259_s3 + $0x1c0] sm:$0xff]  ;;  %v114_v50 = vld [vmem:[%s1259_s3 + $0x1c8] sm:$0xff]  ;;  %v701_v52 = vpack.c.bf16 %v82_v47, %v81_v46 }
   0xd   :  { %696 = vmatpush3.bf16.msra.mxu0 %v695_v33  ;;  %v731_v51 = vpack.c.bf16 %v96_v45, %v95_v44  ;;  %v65_v53 = vld [vmem:[%s1259_s3 + $0x40] sm:$0xff]  ;;  %v66_v54 = vld [vmem:[%s1259_s3 + $0x48] sm:$0xff]  ;;  %v733_v56 = vpack.c.bf16 %v114_v50, %v113_v49  ;;  %v83_v58 = vld [vmem:[%s1259_s3 + $0xd0] sm:$0xff] }
   0xe   :  { %698 = vmatprep.subr.bf16.mxu0 %v697_v39  ;;  %v97_v55 = vld [vmem:[%s1259_s3 + $0x140] sm:$0xff]  ;;  %v98_v57 = vld [vmem:[%s1259_s3 + $0x148] sm:$0xff]  ;;  %v84_v59 = vld [vmem:[%s1259_s3 + $0xd8] sm:$0xff]  ;;  %v703_v62 = vpack.c.bf16 %v66_v54, %v65_v53 }
   0xf   :  { %728 = vmatpush3.bf16.msra.mxu1 %v727_v38  ;;  %v115_v60 = vld [vmem:[%s1259_s3 + $0x1d0] sm:$0xff]  ;;  %v116_v61 = vld [vmem:[%s1259_s3 + $0x1d8] sm:$0xff]  ;;  %v735_v63 = vpack.c.bf16 %v98_v57, %v97_v55  ;;  %v705_v0 = vpack.c.bf16 %v84_v59, %v83_v58  ;;  %v85_v6 = vld [vmem:[%s1259_s3 + $0xe0] sm:$0xff] }
  0x10   :  { %730 = vmatprep.subr.bf16.mxu1 %v729_v43  ;;  %v67_v1 = vld [vmem:[%s1259_s3 + $0x50] sm:$0xff]  ;;  %v68_v2 = vld [vmem:[%s1259_s3 + $0x58] sm:$0xff]  ;;  %v737_v4 = vpack.c.bf16 %v116_v61, %v115_v60  ;;  %v86_v7 = vld [vmem:[%s1259_s3 + $0xe8] sm:$0xff] }
  0x11   :  { %700 = vmatpush3.bf16.msra.mxu0 %v699_v48  ;;  %v99_v3 = vld [vmem:[%s1259_s3 + $0x150] sm:$0xff]  ;;  %v100_v5 = vld [vmem:[%s1259_s3 + $0x158] sm:$0xff]  ;;  %v117_v8 = vld [vmem:[%s1259_s3 + $0x1e0] sm:$0xff]  ;;  %v707_v10 = vpack.c.bf16 %v68_v2, %v67_v1  ;;  %v709_v15 = vpack.c.bf16 %v86_v7, %v85_v6 }
  0x12   :  { %702 = vmatprep.subr.bf16.mxu0 %v701_v52  ;;  %v118_v9 = vld [vmem:[%s1259_s3 + $0x1e8] sm:$0xff]  ;;  %v69_v11 = vld [vmem:[%s1259_s3 + $0x60] sm:$0xff]  ;;  %v739_v14 = vpack.c.bf16 %v100_v5, %v99_v3  ;;  %v87_v20 = vld [vmem:[%s1259_s3 + $0xf0] sm:$0xff] }
  0x13   :  { %732 = vmatpush3.bf16.msra.mxu1 %v731_v51  ;;  %v70_v12 = vld [vmem:[%s1259_s3 + $0x68] sm:$0xff]  ;;  %v101_v13 = vld [vmem:[%s1259_s3 + $0x160] sm:$0xff]  ;;  %v741_v19 = vpack.c.bf16 %v118_v9, %v117_v8  ;;  %v88_v21 = vld [vmem:[%s1259_s3 + $0xf8] sm:$0xff] }
  0x14   :  { %734 = vmatprep.subr.bf16.mxu1 %v733_v56  ;;  %v102_v16 = vld [vmem:[%s1259_s3 + $0x168] sm:$0xff]  ;;  %v36_v23 = vld [vmem:[%s1256_s0 + $0x18] sm:$0xff]  ;;  %v119_v24 = vld [vmem:[%s1259_s3 + $0x1f0] sm:$0xff]  ;;  %v711_v27 = vpack.c.bf16 %v70_v12, %v69_v11  ;;  %v713_v30 = vpack.c.bf16 %v88_v21, %v87_v20 }
  0x15   :  { %704 = vmatpush3.bf16.msra.mxu0 %v703_v62  ;;  %v34_v17 = vld [vmem:[%s1256_s0 + $0x8] sm:$0xff]  ;;  %v120_v25 = vld [vmem:[%s1259_s3 + $0x1f8] sm:$0xff]  ;;  %v743_v29 = vpack.c.bf16 %v102_v16, %v101_v13  ;;  %v71_v31 = vld [vmem:[%s1259_s3 + $0x70] sm:$0xff] }
  0x16   :  { %706 = vmatprep.subr.bf16.mxu0 %v705_v0  ;;  %v42_v18 = vld [vmem:[%s1257_s1 + $0x8] sm:$0xff]  ;;  %v44_v26 = vld [vmem:[%s1257_s1 + $0x18] sm:$0xff]  ;;  %v745_v33 = vpack.c.bf16 %v120_v25, %v119_v24  ;;  %v103_v34 = vld [vmem:[%s1259_s3 + $0x170] sm:$0xff] }
  0x17   :  { %736 = vmatpush3.bf16.msra.mxu1 %v735_v63  ;;  %v50_v22 = vmul.f32 %v42_v18, %v34_v17  ;;  %v52_v28 = vmul.f32 %v44_v26, %v36_v23  ;;  %v72_v32 = vld [vmem:[%s1259_s3 + $0x78] sm:$0xff]  ;;  %v284_v36 = vld [vmem:[%s1261_s5] sm:$0xff]  ;;  %v285_v38 = vld [vmem:[%s1261_s5 + $0x8] sm:$0xff] }
  0x18   :  { %738 = vmatprep.subr.bf16.mxu1 %v737_v4  ;;  %v104_v35 = vld [vmem:[%s1259_s3 + $0x178] sm:$0xff]  ;;  %v33_v37 = vld [vmem:[%s1256_s0] sm:$0xff]  ;;  %v715_v39 = vpack.c.bf16 %v72_v32, %v71_v31  ;;  %v35_v41 = vld [vmem:[%s1256_s0 + $0x10] sm:$0xff]  ;;  %v749_v46 = vpack.c.bf16 %v285_v38, %v284_v36 }
  0x19   :  { %708 = vmatpush3.bf16.msra.mxu0 %v707_v10  ;;  %192 = vmatprep.mubr.f32.mxu0 %v50_v22  ;;  %v41_v40 = vld [vmem:[%s1257_s1] sm:$0xff]  ;;  %v43_v42 = vld [vmem:[%s1257_s1 + $0x10] sm:$0xff]  ;;  %v747_v43 = vpack.c.bf16 %v104_v35, %v103_v34  ;;  %v38_v44 = vld [vmem:[%s1256_s0 + $0x28] sm:$0xff] }
  0x1a   :  { %710 = vmatprep.subr.bf16.mxu0 %v709_v15  ;;  %267 = vmatprep.mubr.f32.mxu1 %v52_v28  ;;  %v46_v45 = vld [vmem:[%s1257_s1 + $0x28] sm:$0xff] }
  0x1b   :  { %740 = vmatpush3.bf16.msra.mxu1 %v739_v14 }
  0x1c   :  { %742 = vmatprep.subr.bf16.mxu1 %v741_v19 }
  0x1d   :  { %712 = vmatpush3.bf16.msra.mxu0 %v711_v27 }
  0x1e   :  { %714 = vmatprep.subr.bf16.mxu0 %v713_v30 }
  0x1f   :  { %744 = vmatpush3.bf16.msra.mxu1 %v743_v29 }
  0x20   :  { %14 = vsyncpa [#allocation3], 0  ;;  %746 = vmatprep.subr.bf16.mxu1 %v745_v33  ;;  %v40_v47 = vld [vmem:[%s1256_s0 + $0x38] sm:$0xff]  ;;  %v49_v49 = vmul.f32 %v41_v40, %v33_v37  ;;  %v286_v50 = vld [vmem:[%s1261_s5 + $0x10] sm:$0xff]  ;;  %v51_v52 = vmul.f32 %v43_v42, %v35_v41  ;;  %v54_v53 = vmul.f32 %v46_v45, %v38_v44 }
  0x21   :  { %v48_v48 = vld [vmem:[%s1257_s1 + $0x38] sm:$0xff]  ;;  %716 = vmatpush3.bf16.msra.mxu0 %v715_v39  ;;  %v37_v54 = vld [vmem:[%s1256_s0 + $0x20] sm:$0xff]  ;;  %v39_v57 = vld [vmem:[%s1256_s0 + $0x30] sm:$0xff] }
  0x22   :  { %v287_v51 = vld [vmem:[%s1261_s5 + $0x18] sm:$0xff]  ;;  %v45_v55 = vld [vmem:[%s1257_s1 + $0x20] sm:$0xff]  ;;  %v56_v56 = vmul.f32 %v48_v48, %v40_v47  ;;  %v47_v58 = vld [vmem:[%s1257_s1 + $0x30] sm:$0xff]  ;;  %750 = vmatprep.subr.bf16.mxu0 %v749_v46 }
  0x23   :  { %748 = vmatpush3.bf16.msra.mxu1 %v747_v43  ;;  %v753_v59 = vpack.c.bf16 %v287_v51, %v286_v50  ;;  %v53_v60 = vmul.f32 %v45_v55, %v37_v54  ;;  %v288_v61 = vld [vmem:[%s1261_s5 + $0x20] sm:$0xff]  ;;  %v289_v62 = vld [vmem:[%s1261_s5 + $0x28] sm:$0xff]  ;;  %v55_v63 = vmul.f32 %v47_v58, %v39_v57  ;;  %v290_v1 = vld [vmem:[%s1261_s5 + $0x30] sm:$0xff] }
  0x24   :  { %193 = vmatmul.mubr.f32.vlgmr.msra.gmra.mrb[0].mxu0 %v49_v49  ;;  %v757_v0 = vpack.c.bf16 %v289_v62, %v288_v61  ;;  %v291_v2 = vld [vmem:[%s1261_s5 + $0x38] sm:$0xff]  ;;  %v292_v4 = vld [vmem:[%s1261_s5 + $0x40] sm:$0xff]  ;;  %v293_v5 = vld [vmem:[%s1261_s5 + $0x48] sm:$0xff] }
  0x25   :  { %197 = vmatprep.mubr.f32.mxu0 %v54_v53  ;;  %752 = vmatpush3.bf16.msra.mxu0 %v749_v46  ;;  %v761_v3 = vpack.c.bf16 %v291_v2, %v290_v1  ;;  %v765_v6 = vpack.c.bf16 %v293_v5, %v292_v4  ;;  %v294_v7 = vld [vmem:[%s1261_s5 + $0x50] sm:$0xff]  ;;  %v295_v8 = vld [vmem:[%s1261_s5 + $0x58] sm:$0xff]  ;;  %v296_v10 = vld [vmem:[%s1261_s5 + $0x60] sm:$0xff] }
  0x26   :  { %268 = vmatmul.mubr.f32.vlgmr.msra.gmra.mrb[0].mxu1 %v51_v52  ;;  %754 = vmatprep.subr.bf16.mxu0 %v753_v59  ;;  %v769_v9 = vpack.c.bf16 %v295_v8, %v294_v7  ;;  %v297_v11 = vld [vmem:[%s1261_s5 + $0x68] sm:$0xff]  ;;  %v298_v13 = vld [vmem:[%s1261_s5 + $0x70] sm:$0xff]  ;;  %v299_v14 = vld [vmem:[%s1261_s5 + $0x78] sm:$0xff] }
  0x27   :  { %272 = vmatprep.mubr.f32.mxu1 %v56_v56  ;;  %v773_v12 = vpack.c.bf16 %v297_v11, %v296_v10  ;;  %v777_v15 = vpack.c.bf16 %v299_v14, %v298_v13  ;;  %v384_v16 = vld [vmem:[%s1263_s7] sm:$0xff]  ;;  %v385_v17 = vld [vmem:[%s1263_s7 + $0x8] sm:$0xff]  ;;  %v386_v18 = vld [vmem:[%s1263_s7 + $0x10] sm:$0xff] }
  0x28   :  { %198 = vmatmul.mubr.f32.gmra.mrb[2].mxu0 %v53_v60  ;;  %v781_v19 = vpack.c.bf16 %v385_v17, %v384_v16  ;;  %v387_v20 = vld [vmem:[%s1263_s7 + $0x18] sm:$0xff]  ;;  %v388_v22 = vld [vmem:[%s1263_s7 + $0x20] sm:$0xff]  ;;  %v389_v23 = vld [vmem:[%s1263_s7 + $0x28] sm:$0xff] }
  0x29   :  { %756 = vmatpush3.bf16.msra.mxu0 %v753_v59  ;;  %v785_v21 = vpack.c.bf16 %v387_v20, %v386_v18  ;;  %v789_v24 = vpack.c.bf16 %v389_v23, %v388_v22  ;;  %v390_v25 = vld [vmem:[%s1263_s7 + $0x30] sm:$0xff]  ;;  %v391_v26 = vld [vmem:[%s1263_s7 + $0x38] sm:$0xff]  ;;  %v392_v28 = vld [vmem:[%s1263_s7 + $0x40] sm:$0xff] }
  0x2a   :  { %273 = vmatmul.mubr.f32.gmra.mrb[2].mxu1 %v55_v63  ;;  %758 = vmatprep.subr.bf16.mxu0 %v757_v0  ;;  %v793_v27 = vpack.c.bf16 %v391_v26, %v390_v25  ;;  %v393_v29 = vld [vmem:[%s1263_s7 + $0x48] sm:$0xff]  ;;  %v394_v31 = vld [vmem:[%s1263_s7 + $0x50] sm:$0xff]  ;;  %v395_v32 = vld [vmem:[%s1263_s7 + $0x58] sm:$0xff] }
  0x2b   :  { %782 = vmatprep.subr.bf16.mxu1 %v781_v19  ;;  %v797_v30 = vpack.c.bf16 %v393_v29, %v392_v28  ;;  %v801_v33 = vpack.c.bf16 %v395_v32, %v394_v31  ;;  %v396_v34 = vld [vmem:[%s1263_s7 + $0x60] sm:$0xff]  ;;  %v397_v35 = vld [vmem:[%s1263_s7 + $0x68] sm:$0xff]  ;;  %v398_v60 = vld [vmem:[%s1263_s7 + $0x70] sm:$0xff] }
  0x2c   :  { %784 = vmatpush3.bf16.msra.mxu1 %v781_v19  ;;  %v805_v36 = vpack.c.bf16 %v397_v35, %v396_v34  ;;  %v500_v38 = vld [vmem:[%s1260_s4] ss:$0 sm:$0xff]  ;;  %v281_v57 = vld [vmem:[%s1258_s2 + $0x8] sm:$0xff]  ;;  %v399_v61 = vld [vmem:[%s1263_s7 + $0x78] sm:$0xff]  ;;  %s840_s7 = smov [#allocation2]  }
  0x2d   :  { %760 = vmatpush3.bf16.msra.mxu0 %v757_v0  ;;  %786 = vmatprep.subr.bf16.mxu1 %v785_v21  ;;  %v280_v52 = vld [vmem:[%s1258_s2] sm:$0xff]  ;;  %v809_v62 = vpack.c.bf16 %v399_v61, %v398_v60  ;;  %s489_s19 = sshll.u32 %s840_s7, 4  ;;  %s490_s19 = int_to_ptr.vmem [resolvable:$true] %s489_s19 }
  0x2e   :  { %762 = vmatprep.subr.bf16.mxu0 %v761_v3  ;;  %v501_v63 = vld [vmem:[%s1262_s6] ss:$0 sm:$0xff]  ;;  %s816_s6 = scalar_lea.vmem %s490_s19, 256  ;;  %p821_p1 = scmp.lt.s32.totalorder %s490_s19, %s490_s19 }
  0x2f   :  { %p817_p0 = scmp.ne.s32.totalorder %s490_s19, %s816_s6  ;;  %p822_p2 = scmp.lt.s32.totalorder %s816_s6, %s816_s6 }
  0x30   :  { %788 = vmatpush3.bf16.msra.mxu1 %v785_v21 }
  0x31   :  { %764 = vmatpush3.bf16.msra.mxu0 %v761_v3  ;;  %790 = vmatprep.subr.bf16.mxu1 %v789_v24  ;;  %p823_p3 = por %p822_p2, %p821_p1 }
  0x32   :  { %766 = vmatprep.subr.bf16.mxu0 %v765_v6 }
  0x33   :  { %p824_p4 = pnand %p823_p3, %p817_p0 }
  0x34   :  { %792 = vmatpush3.bf16.msra.mxu1 %v789_v24 }
  0x35   :  { %768 = vmatpush3.bf16.msra.mxu0 %v765_v6  ;;  %794 = vmatprep.subr.bf16.mxu1 %v793_v27  ;;  %v502_v6 = vld [vmem:[%s1264_s8] ss:$0 sm:$0xff] }
  0x36   :  { %770 = vmatprep.subr.bf16.mxu0 %v769_v9 }
  0x38   :  { %796 = vmatpush3.bf16.msra.mxu1 %v793_v27 }
  0x39   :  { %772 = vmatpush3.bf16.msra.mxu0 %v769_v9  ;;  %798 = vmatprep.subr.bf16.mxu1 %v797_v30 }
  0x3a   :  { %774 = vmatprep.subr.bf16.mxu0 %v773_v12 }
  0x3c   :  { %800 = vmatpush3.bf16.msra.mxu1 %v797_v30 }
  0x3d   :  { %776 = vmatpush3.bf16.msra.mxu0 %v773_v12  ;;  %802 = vmatprep.subr.bf16.mxu1 %v801_v33 }
  0x3e   :  { %778 = vmatprep.subr.bf16.mxu0 %v777_v15 }
  0x40   :  { %804 = vmatpush3.bf16.msra.mxu1 %v801_v33 }
  0x41   :  { %780 = vmatpush3.bf16.msra.mxu0 %v777_v15  ;;  %806 = vmatprep.subr.bf16.mxu1 %v805_v36 }
  0x44   :  { %808 = vmatpush3.bf16.msra.mxu1 %v805_v36 }
  0x45   :  { %810 = vmatprep.subr.bf16.mxu1 %v809_v62 }
  0x48   :  { %812 = vmatpush3.bf16.msra.mxu1 %v809_v62 }
  0xf7   :  { %v535_v37 = vpop.f32.mrb[0].mxu0 }
  0xf8   :  { %v536_v39 = vpop.f32.mrb[1].mxu0 }
  0xf9   :  { %v573_v40 = vpop.f32.mrb[0].mxu1  ;;  %v537_v41 = vadd.f32 %v536_v39, %v535_v37 }
  0xfa   :  { %v574_v42 = vpop.f32.mrb[1].mxu1 }
  0xfb   :  { %v575_v43 = vadd.f32 %v574_v42, %v573_v40  ;;  %v195_v44 = vadd.f32 %v537_v41, %v500_v38  ;;  %v538_v45 = vpop.f32.mrb[2].mxu0 }
  0xfc   :  { %v539_v46 = vpop.f32.mrb[3].mxu0 }
  0xfd   :  { %v576_v47 = vpop.f32.mrb[2].mxu1  ;;  %v270_v48 = vadd.f32 %v575_v43, %v195_v44  ;;  %v540_v49 = vadd.f32 %v539_v46, %v538_v45 }
  0xfe   :  { %v577_v50 = vpop.f32.mrb[3].mxu1 }
  0xff   :  { %v578_v51 = vadd.f32 %v577_v50, %v576_v47  ;;  %v278_v53 = vmax.f32 %v270_v48, 0.0  ;;  %v200_v54 = vadd.f32 %v540_v49, %v500_v38 }
 0x101   :  { %v275_v55 = vadd.f32 %v578_v51, %v200_v54  ;;  %v282_v56 = vmul.f32 %v280_v52, %v278_v53 }
 0x103   :  { %v279_v58 = vmax.f32 %v275_v55, 0.0  ;;  %647 = vmatprep.mubr.f32.mxu0 %v282_v56 }
 0x105   :  { %v283_v59 = vmul.f32 %v281_v57, %v279_v58 }
 0x107   :  { %648 = vmatmul.mubr.f32.vlgmr.msra.gmra.mrb[4].mxu0 %v283_v59 }
 0x1da   :  { %v649_v0 = vpop.f32.mrb[4].mxu0 }
 0x1db   :  { %v379_v1 = vadd.f32 %v649_v0, %v501_v63  ;;  %v373_v2 = vpop.f32.mrb[5].mxu0 }
 0x1dc   :  { %v374_v3 = vadd.f32 %v501_v63, %v373_v2 }
 0x1dd   :  { %v383_v5 = vmax.f32 %v379_v1, 0.0 }
 0x1de   :  { %v382_v4 = vmax.f32 %v374_v3, 0.0 }
 0x1e0   :  { %682 = vmatprep.mubr.f32.mxu1 %v382_v4 }
 0x1e1   :  { %683 = vmatmul.mubr.f32.vlgmr.msra.gmra.mrb[4].mxu1 %v383_v5 }
 0x2b4   :  { %v684_v7 = vpop.f32.mrb[4].mxu1 }
 0x2b5   :  { %v479_v8 = vadd.f32 %v684_v7, %v502_v6  ;;  %v473_v9 = vpop.f32.mrb[5].mxu1 }
 0x2b6   :  { %v474_v10 = vadd.f32 %v502_v6, %v473_v9 }
 0x2b7   :  { %483 = vst [vmem:[#allocation2 + $0x8] sm:$0xff] %v479_v8 }
 0x2b8   :  { %482 = vst [vmem:[#allocation2] sm:$0xff] %v474_v10 }
 0x2b9   :  { %827 = shalt.err (!%p824_p4)
}
 0x2ba   :  { %s828_s8 = scalar_lea.hbm %s1265_s9, 256 }
 0x2bb   :  { %p829_p5 = scmp.ne.s32.totalorder %s1265_s9, %s828_s8  ;;  %p832_p6 = scmp.lt.u32.totalorder %s828_s8, %s1265_s9 }
 0x2bd   :  { %p834_p7 = pnand %p832_p6, %p829_p5 }
 0x2bf   :  { %837 = shalt.err (!%p834_p7)
}
 0x2c0   :  { %s841_s26 = smov 128   ;;  %s842_s3 = smov 8  }
 0x2c1   :  { %495 = dma.vmem_to_hbm [thread:$0]  %s490_s19, 256, %s1265_s9, [#allocation3], %s841_s26, %s841_s26, %s842_s3  }
 0x2c2   :  { %838 = dma.done.wait [#allocation3], 256  }
 0x2c3   :  { %839 = vsyncadd [#allocation3], 4294967040 }
 0x2c4   :  { %499 = vsyncpa [#allocation3], 1 }

</bundles_post_ra>
